<compile_context>
chip_gen: v7x
topology: tpu7x:2x2x1
jax: 0.10.0
libtpu: 0.0.40
codegen_flags: <defaults>
</compile_context>

<pallas_src>
import jax
import jax.numpy as jnp
from jax.experimental import pallas as pl
from jax.experimental.pallas import tpu as pltpu


def _round_up(x, m):
    return ((x + m - 1) // m) * m


# ----------------------------------------------------------------------------
# Shared fused MLP head for one row tile:
#   h1  = relu(ue @ W1u + ie @ W1i + b1)   # split-K Linear(2D, D): no lane concat
#   h2  = relu(h1 @ W2 + b2)               # Linear(D, D/2)
#   out = sigmoid(w3 @ h2^T + b3)          # Linear(D/2, 1), emitted lane-dense (1, TB)
# ----------------------------------------------------------------------------
def _mlp_head(ue_bf16, ie_bf16, w1u_ref, w1i_ref, b1_ref, w2_ref, b2_ref,
              w3_ref, b3_ref, out_ref):
    h1 = jnp.dot(ue_bf16, w1u_ref[...], preferred_element_type=jnp.float32)
    h1 = h1 + jnp.dot(ie_bf16, w1i_ref[...], preferred_element_type=jnp.float32)
    h1 = jnp.maximum(h1 + b1_ref[...], 0.0)                       # (TB, D) f32

    h2 = jnp.dot(h1.astype(jnp.bfloat16), w2_ref[...],
                 preferred_element_type=jnp.float32)
    h2 = jnp.maximum(h2 + b2_ref[...], 0.0)                       # (TB, D/2) f32

    # Final Linear(D/2, 1) as (1, D/2) @ (D/2, TB) -> (1, TB): output block writes
    # full 128-lane vectors instead of masked last-dim-1 stores.
    logits_t = jnp.dot(w3_ref[...], h2.T, preferred_element_type=jnp.float32)
    out_ref[...] = jax.nn.sigmoid(logits_t + b3_ref[...])         # (1, TB) f32


# ----------------------------------------------------------------------------
# Path A kernel: fused in-kernel gather (tables resident in VMEM).
#   indices stream as (TB, 1) int32 tiles; gather = one-hot x table on the MXU
#   (exact for bf16 table values: each output row is one table row * 1.0).
# ----------------------------------------------------------------------------
def _fused_gather_mlp_kernel(uidx_ref, iidx_ref, utab_ref, itab_ref,
                             w1u_ref, w1i_ref, b1_ref, w2_ref, b2_ref,
                             w3_ref, b3_ref, out_ref):
    tb = uidx_ref.shape[0]
    nu = utab_ref.shape[0]
    ni = itab_ref.shape[0]

    iota_u = jax.lax.broadcasted_iota(jnp.int32, (tb, nu), 1)
    iota_i = jax.lax.broadcasted_iota(jnp.int32, (tb, ni), 1)
    onehot_u = jnp.where(uidx_ref[...] == iota_u, 1.0, 0.0).astype(jnp.bfloat16)
    onehot_i = jnp.where(iidx_ref[...] == iota_i, 1.0, 0.0).astype(jnp.bfloat16)

    ue = jnp.dot(onehot_u, utab_ref[...],
                 preferred_element_type=jnp.float32).astype(jnp.bfloat16)
    ie = jnp.dot(onehot_i, itab_ref[...],
                 preferred_element_type=jnp.float32).astype(jnp.bfloat16)

    _mlp_head(ue, ie, w1u_ref, w1i_ref, b1_ref, w2_ref, b2_ref,
              w3_ref, b3_ref, out_ref)


# ----------------------------------------------------------------------------
# Path B kernel: embeddings already gathered (bf16) and streamed per tile.
# ----------------------------------------------------------------------------
def _streamed_mlp_kernel(ue_ref, ie_ref, w1u_ref, w1i_ref, b1_ref,
                         w2_ref, b2_ref, w3_ref, b3_ref, out_ref):
    _mlp_head(ue_ref[...], ie_ref[...], w1u_ref, w1i_ref, b1_ref,
              w2_ref, b2_ref, w3_ref, b3_ref, out_ref)


# ----------------------------------------------------------------------------
# Wrapper: edge_index=None branch of GATModel.forward (inference).
# ----------------------------------------------------------------------------
def gat_predict(user_indices, item_indices, prepared, *, tile_b=1024,
                fuse_gather=None):
    utab = prepared["user_tab"]                                   # (NU, D) bf16
    itab = prepared["item_tab"]                                   # (NI, D) bf16
    NU, D = utab.shape
    NI = itab.shape[0]
    B = int(user_indices.shape[0])

    # Row-tile selection: multiple of 128 (lane-dense output tile + bf16 sublane
    # packing), clipped to the padded batch; big tiles amortize the ~0.35 us
    # per-grid-step pipeline overhead.  For B >= 512 keep >= 2 grid steps so the
    # "parallel" axis can shard across both TensorCores on v7x.
    tile_b = max(128, (min(int(tile_b), 2048) // 128) * 128)
    tile_b = min(tile_b, _round_up(B, 128))
    if B >= 512:
        tile_b = min(tile_b, _round_up(pl.cdiv(B, 2), 128))
    n_tiles = pl.cdiv(B, tile_b)
    padded_B = n_tiles * tile_b

    if padded_B != B:
        pad = padded_B - B
        zpad = jnp.zeros((pad,), user_indices.dtype)
        user_indices = jnp.concatenate([user_indices, zpad])
        item_indices = jnp.concatenate([item_indices, zpad])

    if fuse_gather is None:
        # Keep tables VMEM-resident only while the in-kernel one-hot gather stays
        # cheap and the footprint is far under the 48 MiB budget (v7x: 64 MiB
        # physical VMEM).  Bigger tables fall back to the XLA bf16 gather path.
        fuse_gather = ((NU + NI) * D * 2 <= 4 * 1024 * 1024
                       and max(NU, NI) <= 8192)

    w_args = (prepared["w1u"], prepared["w1i"], prepared["b1"],
              prepared["w2"], prepared["b2"], prepared["w3"], prepared["b3"])
    const = lambda a: pl.BlockSpec(a.shape, lambda i: (0, 0))
    w_specs = [const(a) for a in w_args]

    out_shape = jax.ShapeDtypeStruct((n_tiles, 1, tile_b), jnp.float32)
    out_spec = pl.BlockSpec((None, 1, tile_b), lambda i: (i, 0, 0))
    cparams = pltpu.CompilerParams(
        dimension_semantics=("parallel",),
        vmem_limit_bytes=48 * 1024 * 1024,
    )

    if fuse_gather:
        uidx = user_indices.astype(jnp.int32).reshape(padded_B, 1)
        iidx = item_indices.astype(jnp.int32).reshape(padded_B, 1)
        out = pl.pallas_call(
            _fused_gather_mlp_kernel,
            out_shape=out_shape,
            grid_spec=pltpu.PrefetchScalarGridSpec(
                num_scalar_prefetch=0,
                grid=(n_tiles,),
                in_specs=[
                    pl.BlockSpec((tile_b, 1), lambda i: (i, 0)),  # user idx tile
                    pl.BlockSpec((tile_b, 1), lambda i: (i, 0)),  # item idx tile
                    const(utab), const(itab),                     # VMEM-resident tables
                    *w_specs,
                ],
                out_specs=out_spec,
            ),
            compiler_params=cparams,
        )(uidx, iidx, utab, itab, *w_args)
    else:
        # Big-table fallback: gather bf16 rows in XLA, stream tiles into the kernel.
        ue = utab[user_indices]                                   # (Bp, D) bf16
        ie = itab[item_indices]                                   # (Bp, D) bf16
        out = pl.pallas_call(
            _streamed_mlp_kernel,
            out_shape=out_shape,
            grid_spec=pltpu.PrefetchScalarGridSpec(
                num_scalar_prefetch=0,
                grid=(n_tiles,),
                in_specs=[
                    pl.BlockSpec((tile_b, D), lambda i: (i, 0)),  # user_emb tile
                    pl.BlockSpec((tile_b, D), lambda i: (i, 0)),  # item_emb tile
                    *w_specs,
                ],
                out_specs=out_spec,
            ),
            compiler_params=cparams,
        )(ue, ie, *w_args)

    return out.reshape(-1)[:B]                                    # squeeze(-1)


# ----------------------------------------------------------------------------
# Deterministic parameter construction (mirrors shapes in GATModel.__init__)
# ----------------------------------------------------------------------------
def init_params(key, num_users, num_items, embedding_dim):
    ks = jax.random.split(key, 8)

    def xavier(k, shape):
        bound = (6.0 / (shape[0] + shape[1])) ** 0.5
        return jax.random.uniform(k, shape, jnp.float32, -bound, bound)

    D = embedding_dim
    return {
        "user_emb": xavier(ks[0], (num_users, D)),
        "item_emb": xavier(ks[1], (num_items, D)),
        # prediction_mlp: Linear(2D,D) -> ReLU -> Linear(D,D//2) -> ReLU -> Linear(D//2,1)
        # weights stored pre-transposed as (in_features, out_features)
        "w1": xavier(ks[2], (2 * D, D)),
        "b1": jnp.zeros((1, D), jnp.float32),
        "w2": xavier(ks[3], (D, D // 2)),
        "b2": jnp.zeros((1, D // 2), jnp.float32),
        "w3": xavier(ks[4], (D // 2, 1)),
        "b3": jnp.zeros((1, 1), jnp.float32),
    }


def prepare_params(params):
    """One-time conversion of f32 master params into kernel-ready operands
    (bf16 tables / MXU weights, W1 split, w3 pre-transposed).  Kept out of the
    per-call path so no casts/slices are re-issued on every prediction call."""
    D = params["user_emb"].shape[1]
    w1 = params["w1"]
    return {
        "user_tab": params["user_emb"].astype(jnp.bfloat16),      # (NU, D)
        "item_tab": params["item_emb"].astype(jnp.bfloat16),      # (NI, D)
        "w1u": w1[:D].astype(jnp.bfloat16),                       # (D, D)
        "w1i": w1[D:].astype(jnp.bfloat16),                       # (D, D)
        "b1": params["b1"].astype(jnp.float32),                   # (1, D)
        "w2": params["w2"].astype(jnp.bfloat16),                  # (D, D//2)
        "b2": params["b2"].astype(jnp.float32),                   # (1, D//2)
        "w3": params["w3"].reshape(1, -1).astype(jnp.float32),    # (1, D//2)
        "b3": params["b3"].astype(jnp.float32),                   # (1, 1)
    }


def _reference(user_indices, item_indices, params):
    """Pure-JAX f32 reference of the same forward branch."""
    ue = params["user_emb"][user_indices]
    ie = params["item_emb"][item_indices]
    x = jnp.concatenate([ue, ie], axis=1)
    h1 = jax.nn.relu(x @ params["w1"] + params["b1"])
    h2 = jax.nn.relu(h1 @ params["w2"] + params["b2"])
    return jax.nn.sigmoid(h2 @ params["w3"] + params["b3"])[:, 0]


if __name__ == "__main__":
    key = jax.random.PRNGKey(0)
    num_users, num_items, embedding_dim = 32, 48, 32
    batch = 16

    params = init_params(key, num_users, num_items, embedding_dim)
    prepared = prepare_params(params)

    k_u, k_i = jax.random.split(jax.random.PRNGKey(1))
    user_indices = jax.random.randint(k_u, (batch,), 0, num_users)
    item_indices = jax.random.randint(k_i, (batch,), 0, num_items)

    ref = _reference(user_indices, item_indices, params)

    # Path A: fused in-kernel gather (tables resident in VMEM).
    preds = gat_predict(user_indices, item_indices, prepared)
    preds = jax.block_until_ready(preds)
    assert preds.shape == (batch,)
    assert bool(jnp.all((preds >= 0.0) & (preds <= 1.0)))
    # bf16 tables / weights vs f32 reference: loose-but-acceptable post-sigmoid tol.
    err_a = float(jnp.max(jnp.abs(preds - ref)))
    assert err_a < 2e-2, f"fused-gather path: max abs error vs f32 reference: {err_a}"

    # Path B: big-table fallback (XLA bf16 gather + streamed tiles), same MLP head.
    preds_b = gat_predict(user_indices, item_indices, prepared, fuse_gather=False)
    preds_b = jax.block_until_ready(preds_b)
    err_b = float(jnp.max(jnp.abs(preds_b - ref)))
    assert err_b < 2e-2, f"streamed path: max abs error vs f32 reference: {err_b}"

    print("KERNEL_OK")
</pallas_src>

<mosaic_0001>
module attributes {stable_mosaic.version = 11 : i64} {
  func.func @_fused_gather_mlp_kernel(%arg0: i32, %arg1: memref<128x1xi32, #tpu.memory_space<vmem>>, %arg2: memref<128x1xi32, #tpu.memory_space<vmem>>, %arg3: memref<32x32xbf16, #tpu.memory_space<vmem>>, %arg4: memref<48x32xbf16, #tpu.memory_space<vmem>>, %arg5: memref<32x32xbf16, #tpu.memory_space<vmem>>, %arg6: memref<32x32xbf16, #tpu.memory_space<vmem>>, %arg7: memref<1x32xf32, #tpu.memory_space<vmem>>, %arg8: memref<32x16xbf16, #tpu.memory_space<vmem>>, %arg9: memref<1x16xf32, #tpu.memory_space<vmem>>, %arg10: memref<1x16xf32, #tpu.memory_space<vmem>>, %arg11: memref<1x1xf32, #tpu.memory_space<vmem>>, %arg12: memref<1x1x128xf32, #tpu.memory_space<vmem>>) attributes {dimension_semantics = [#tpu.dimension_semantics<parallel>], iteration_bounds = array<i64: 1>, scalar_prefetch = 0 : i64, scratch_operands = 0 : i64, tpu.core_type = #tpu.core_type<tc>, window_params = [{transform_indices = @transform_0, window_bounds = array<i64: 128, 1>}, {transform_indices = @transform_1, window_bounds = array<i64: 128, 1>}, {pipeline_mode = #tpu.pipeline_mode<synchronous>, transform_indices = @transform_2, window_bounds = array<i64: 32, 32>}, {pipeline_mode = #tpu.pipeline_mode<synchronous>, transform_indices = @transform_3, window_bounds = array<i64: 48, 32>}, {pipeline_mode = #tpu.pipeline_mode<synchronous>, transform_indices = @transform_4, window_bounds = array<i64: 32, 32>}, {pipeline_mode = #tpu.pipeline_mode<synchronous>, transform_indices = @transform_5, window_bounds = array<i64: 32, 32>}, {pipeline_mode = #tpu.pipeline_mode<synchronous>, transform_indices = @transform_6, window_bounds = array<i64: 1, 32>}, {pipeline_mode = #tpu.pipeline_mode<synchronous>, transform_indices = @transform_7, window_bounds = array<i64: 32, 16>}, {pipeline_mode = #tpu.pipeline_mode<synchronous>, transform_indices = @transform_8, window_bounds = array<i64: 1, 16>}, {pipeline_mode = #tpu.pipeline_mode<synchronous>, transform_indices = @transform_9, window_bounds = array<i64: 1, 16>}, {pipeline_mode = #tpu.pipeline_mode<synchronous>, transform_indices = @transform_10, window_bounds = array<i64: 1, 1>}, {transform_indices = @transform_11, window_bounds = array<i64: 1, 1, 128>}]} {
    %0 = tpu.iota {dimensions = array<i32: 1>} : vector<128x32xi32>
    %1 = tpu.iota {dimensions = array<i32: 1>} : vector<128x48xi32>
    %c0 = arith.constant 0 : index
    %c0_0 = arith.constant 0 : index
    %2 = vector.load %arg1[%c0, %c0_0] : memref<128x1xi32, #tpu.memory_space<vmem>>, vector<128x1xi32>
    %3 = vector.broadcast %2 : vector<128x1xi32> to vector<128x32xi32>
    %4 = arith.cmpi eq, %3, %0 : vector<128x32xi32>
    %cst = arith.constant 1.000000e+00 : f32
    %cst_1 = arith.constant 0.000000e+00 : f32
    %5 = vector.broadcast %cst : f32 to vector<128x32xf32>
    %6 = vector.broadcast %cst_1 : f32 to vector<128x32xf32>
    %7 = arith.select %4, %5, %6 : vector<128x32xi1>, vector<128x32xf32>
    %8 = arith.truncf %7 : vector<128x32xf32> to vector<128x32xbf16>
    %c0_2 = arith.constant 0 : index
    %c0_3 = arith.constant 0 : index
    %9 = vector.load %arg2[%c0_2, %c0_3] : memref<128x1xi32, #tpu.memory_space<vmem>>, vector<128x1xi32>
    %10 = vector.broadcast %9 : vector<128x1xi32> to vector<128x48xi32>
    %11 = arith.cmpi eq, %10, %1 : vector<128x48xi32>
    %cst_4 = arith.constant 1.000000e+00 : f32
    %cst_5 = arith.constant 0.000000e+00 : f32
    %12 = vector.broadcast %cst_4 : f32 to vector<128x48xf32>
    %13 = vector.broadcast %cst_5 : f32 to vector<128x48xf32>
    %14 = arith.select %11, %12, %13 : vector<128x48xi1>, vector<128x48xf32>
    %15 = arith.truncf %14 : vector<128x48xf32> to vector<128x48xbf16>
    %c0_6 = arith.constant 0 : index
    %c0_7 = arith.constant 0 : index
    %16 = vector.load %arg3[%c0_6, %c0_7] : memref<32x32xbf16, #tpu.memory_space<vmem>>, vector<32x32xbf16>
    %cst_8 = arith.constant dense<0.000000e+00> : vector<128x32xf32>
    %17 = tpu.matmul %8, %16, %cst_8 {dimension_numbers = #tpu.dot_dimension_numbers<[1], [0], [0], [1], [0, 0, 1, 1], [], []>} : vector<128x32xbf16>, vector<32x32xbf16>, vector<128x32xf32> -> vector<128x32xf32>
    %18 = arith.truncf %17 : vector<128x32xf32> to vector<128x32xbf16>
    %c0_9 = arith.constant 0 : index
    %c0_10 = arith.constant 0 : index
    %19 = vector.load %arg4[%c0_9, %c0_10] : memref<48x32xbf16, #tpu.memory_space<vmem>>, vector<48x32xbf16>
    %cst_11 = arith.constant dense<0.000000e+00> : vector<128x32xf32>
    %20 = tpu.matmul %15, %19, %cst_11 {dimension_numbers = #tpu.dot_dimension_numbers<[1], [0], [0], [1], [0, 0, 1, 1], [], []>} : vector<128x48xbf16>, vector<48x32xbf16>, vector<128x32xf32> -> vector<128x32xf32>
    %21 = arith.truncf %20 : vector<128x32xf32> to vector<128x32xbf16>
    %c0_12 = arith.constant 0 : index
    %c0_13 = arith.constant 0 : index
    %22 = vector.load %arg5[%c0_12, %c0_13] : memref<32x32xbf16, #tpu.memory_space<vmem>>, vector<32x32xbf16>
    %cst_14 = arith.constant dense<0.000000e+00> : vector<128x32xf32>
    %23 = tpu.matmul %18, %22, %cst_14 {dimension_numbers = #tpu.dot_dimension_numbers<[1], [0], [0], [1], [0, 0, 1, 1], [], []>} : vector<128x32xbf16>, vector<32x32xbf16>, vector<128x32xf32> -> vector<128x32xf32>
    %c0_15 = arith.constant 0 : index
    %c0_16 = arith.constant 0 : index
    %24 = vector.load %arg6[%c0_15, %c0_16] : memref<32x32xbf16, #tpu.memory_space<vmem>>, vector<32x32xbf16>
    %cst_17 = arith.constant dense<0.000000e+00> : vector<128x32xf32>
    %25 = tpu.matmul %21, %24, %cst_17 {dimension_numbers = #tpu.dot_dimension_numbers<[1], [0], [0], [1], [0, 0, 1, 1], [], []>} : vector<128x32xbf16>, vector<32x32xbf16>, vector<128x32xf32> -> vector<128x32xf32>
    %26 = arith.addf %23, %25 : vector<128x32xf32>
    %c0_18 = arith.constant 0 : index
    %c0_19 = arith.constant 0 : index
    %27 = vector.load %arg7[%c0_18, %c0_19] : memref<1x32xf32, #tpu.memory_space<vmem>>, vector<1x32xf32>
    %28 = vector.broadcast %27 : vector<1x32xf32> to vector<128x32xf32>
    %29 = arith.addf %26, %28 : vector<128x32xf32>
    %cst_20 = arith.constant 0.000000e+00 : f32
    %30 = vector.broadcast %cst_20 : f32 to vector<128x32xf32>
    %31 = arith.maximumf %29, %30 : vector<128x32xf32>
    %32 = arith.truncf %31 : vector<128x32xf32> to vector<128x32xbf16>
    %c0_21 = arith.constant 0 : index
    %c0_22 = arith.constant 0 : index
    %33 = vector.load %arg8[%c0_21, %c0_22] : memref<32x16xbf16, #tpu.memory_space<vmem>>, vector<32x16xbf16>
    %cst_23 = arith.constant dense<0.000000e+00> : vector<128x16xf32>
    %34 = tpu.matmul %32, %33, %cst_23 {dimension_numbers = #tpu.dot_dimension_numbers<[1], [0], [0], [1], [0, 0, 1, 1], [], []>} : vector<128x32xbf16>, vector<32x16xbf16>, vector<128x16xf32> -> vector<128x16xf32>
    %c0_24 = arith.constant 0 : index
    %c0_25 = arith.constant 0 : index
    %35 = vector.load %arg9[%c0_24, %c0_25] : memref<1x16xf32, #tpu.memory_space<vmem>>, vector<1x16xf32>
    %36 = vector.broadcast %35 : vector<1x16xf32> to vector<128x16xf32>
    %37 = arith.addf %34, %36 : vector<128x16xf32>
    %cst_26 = arith.constant 0.000000e+00 : f32
    %38 = vector.broadcast %cst_26 : f32 to vector<128x16xf32>
    %39 = arith.maximumf %37, %38 : vector<128x16xf32>
    %c0_27 = arith.constant 0 : index
    %c0_28 = arith.constant 0 : index
    %40 = vector.load %arg10[%c0_27, %c0_28] : memref<1x16xf32, #tpu.memory_space<vmem>>, vector<1x16xf32>
    %41 = tpu.transpose %39, [1, 0] : vector<128x16xf32> -> vector<16x128xf32>
    %cst_29 = arith.constant dense<0.000000e+00> : vector<1x128xf32>
    %42 = tpu.matmul %40, %41, %cst_29 {dimension_numbers = #tpu.dot_dimension_numbers<[1], [0], [0], [1], [0, 0, 1, 1], [], []>} : vector<1x16xf32>, vector<16x128xf32>, vector<1x128xf32> -> vector<1x128xf32>
    %c0_30 = arith.constant 0 : index
    %c0_31 = arith.constant 0 : index
    %43 = vector.load %arg11[%c0_30, %c0_31] : memref<1x1xf32, #tpu.memory_space<vmem>>, vector<1x1xf32>
    %44 = vector.broadcast %43 : vector<1x1xf32> to vector<1x128xf32>
    %45 = arith.addf %42, %44 : vector<1x128xf32>
    %46 = arith.negf %45 : vector<1x128xf32>
    %47 = math.exp %46 : vector<1x128xf32>
    %cst_32 = arith.constant 1.000000e+00 : f32
    %48 = vector.broadcast %cst_32 : f32 to vector<1x128xf32>
    %49 = arith.addf %48, %47 : vector<1x128xf32>
    %50 = arith.divf %48, %49 : vector<1x128xf32>
    %c0_33 = arith.constant 0 : index
    %c0_34 = arith.constant 0 : index
    %c0_35 = arith.constant 0 : index
    %51 = vector.load %arg12[%c0_33, %c0_34, %c0_35] : memref<1x1x128xf32, #tpu.memory_space<vmem>>, vector<1x1x128xf32>
    %52 = vector.shape_cast %51 : vector<1x1x128xf32> to vector<1x128xf32>
    %53 = vector.shape_cast %50 : vector<1x128xf32> to vector<1x1x128xf32>
    tpu.vector_store %arg12[%c0_33, %c0_34, %c0_35], %53 {strides = array<i32>} : memref<1x1x128xf32, #tpu.memory_space<vmem>>, vector<1x1x128xf32>,
    return
  }
  func.func @transform_0(%arg0: i32) -> (i32, i32) {
    %c0_i32 = arith.constant 0 : i32
    %c0_i32_0 = arith.constant 0 : i32
    return %arg0, %c0_i32 : i32, i32
  }
  func.func @transform_1(%arg0: i32) -> (i32, i32) {
    %c0_i32 = arith.constant 0 : i32
    %c0_i32_0 = arith.constant 0 : i32
    return %arg0, %c0_i32 : i32, i32
  }
  func.func @transform_2(%arg0: i32) -> (i32, i32) {
    %c0_i32 = arith.constant 0 : i32
    %c0_i32_0 = arith.constant 0 : i32
    %c0_i32_1 = arith.constant 0 : i32
    return %c0_i32, %c0_i32_0 : i32, i32
  }
  func.func @transform_3(%arg0: i32) -> (i32, i32) {
    %c0_i32 = arith.constant 0 : i32
    %c0_i32_0 = arith.constant 0 : i32
    %c0_i32_1 = arith.constant 0 : i32
    return %c0_i32, %c0_i32_0 : i32, i32
  }
  func.func @transform_4(%arg0: i32) -> (i32, i32) {
    %c0_i32 = arith.constant 0 : i32
    %c0_i32_0 = arith.constant 0 : i32
    %c0_i32_1 = arith.constant 0 : i32
    return %c0_i32, %c0_i32_0 : i32, i32
  }
  func.func @transform_5(%arg0: i32) -> (i32, i32) {
    %c0_i32 = arith.constant 0 : i32
    %c0_i32_0 = arith.constant 0 : i32
    %c0_i32_1 = arith.constant 0 : i32
    return %c0_i32, %c0_i32_0 : i32, i32
  }
  func.func @transform_6(%arg0: i32) -> (i32, i32) {
    %c0_i32 = arith.constant 0 : i32
    %c0_i32_0 = arith.constant 0 : i32
    %c0_i32_1 = arith.constant 0 : i32
    return %c0_i32, %c0_i32_0 : i32, i32
  }
  func.func @transform_7(%arg0: i32) -> (i32, i32) {
    %c0_i32 = arith.constant 0 : i32
    %c0_i32_0 = arith.constant 0 : i32
    %c0_i32_1 = arith.constant 0 : i32
    return %c0_i32, %c0_i32_0 : i32, i32
  }
  func.func @transform_8(%arg0: i32) -> (i32, i32) {
    %c0_i32 = arith.constant 0 : i32
    %c0_i32_0 = arith.constant 0 : i32
    %c0_i32_1 = arith.constant 0 : i32
    return %c0_i32, %c0_i32_0 : i32, i32
  }
  func.func @transform_9(%arg0: i32) -> (i32, i32) {
    %c0_i32 = arith.constant 0 : i32
    %c0_i32_0 = arith.constant 0 : i32
    %c0_i32_1 = arith.constant 0 : i32
    return %c0_i32, %c0_i32_0 : i32, i32
  }
  func.func @transform_10(%arg0: i32) -> (i32, i32) {
    %c0_i32 = arith.constant 0 : i32
    %c0_i32_0 = arith.constant 0 : i32
    %c0_i32_1 = arith.constant 0 : i32
    return %c0_i32, %c0_i32_0 : i32, i32
  }
  func.func @transform_11(%arg0: i32) -> (i32, i32, i32) {
    %c0_i32 = arith.constant 0 : i32
    %c0_i32_0 = arith.constant 0 : i32
    %c0_i32_1 = arith.constant 0 : i32
    return %arg0, %c0_i32, %c0_i32_0 : i32, i32, i32
  }
}

</mosaic_0001>

<bundles_post_ra>
// kernel: tpu_custom_call.1
= control target key start
LH: loop header
LB: loop body
LE: loop exit
PB: predicated region body
PF: predicated region fallthrough
CT: control target
= control target key end

     0   :  { %s1919_s0 = inlined_call_operand.vmem [shape: s32[128,1], index: 0, kind: input, shape index: {}]   ;;  %s1920_s1 = inlined_call_operand.vmem [shape: s32[128,1], index: 1, kind: input, shape index: {}]   ;;  %s1921_s2 = inlined_call_operand.vmem [shape: bf16[32,32], index: 2, kind: input, shape index: {}]   ;;  %s1922_s3 = inlined_call_operand.vmem [shape: bf16[48,32], index: 3, kind: input, shape index: {}]   ;;  %s1923_s4 = inlined_call_operand.vmem [shape: bf16[32,32], index: 4, kind: input, shape index: {}]   ;;  %s1924_s5 = inlined_call_operand.vmem [shape: bf16[32,32], index: 5, kind: input, shape index: {}]   ;;  %s1925_s6 = inlined_call_operand.vmem [shape: f32[1,32], index: 6, kind: input, shape index: {}]   ;;  %s1926_s7 = inlined_call_operand.vmem [shape: bf16[32,16], index: 7, kind: input, shape index: {}]   ;;  %s1927_s8 = inlined_call_operand.vmem [shape: f32[1,16], index: 8, kind: input, shape index: {}]   ;;  %s1928_s9 = inlined_call_operand.vmem [shape: f32[1,16], index: 9, kind: input, shape index: {}]   ;;  %s1929_s10 = inlined_call_operand.<no memory space> [shape: f32[1,1], index: 10, kind: input, shape index: {}]   ;;  %s1930_s11 = inlined_call_operand.hbm [shape: f32[1,1,128], index: 11, kind: output, shape index: {}]  }
   0x1   :  { %v16_v0 = vstv %s1929_s10 }
   0x2   :  { %17 = vst [vmem:[#allocation2] sm:$0x1] %v16_v0 }
   0x3   :  { %v150_v1 = vld [vmem:[%s1920_s1 + $0x10] sm:$0xff]  ;;  %v148_v2 = vld [vmem:[%s1920_s1] sm:$0xff]  ;;  %v1557_v3 = vmov 0   ;;  %v151_v4 = vld [vmem:[%s1920_s1 + $0x18] sm:$0xff] }
   0x4   :  { %1517 = vset.pattern.permute.xlu1 %v1557_v3  ;;  %1516 = vset.pattern.permute.xlu0 %v1557_v3  ;;  %v149_v5 = vld [vmem:[%s1920_s1 + $0x8] sm:$0xff]  ;;  %v152_v7 = vld [vmem:[%s1920_s1 + $0x20] sm:$0xff]  ;;  %v155_v8 = vld [vmem:[%s1920_s1 + $0x38] sm:$0xff] }
   0x5   :  { %171 = vperm.xlu1 %1517, %v150_v1   ;;  %165 = vperm.xlu0 %1516, %v148_v2   ;;  %v153_v6 = vld [vmem:[%s1920_s1 + $0x28] sm:$0xff]  ;;  %v154_v9 = vld [vmem:[%s1920_s1 + $0x30] sm:$0xff]  ;;  %v1518_v10 = vld [vmem:[%s1922_s3] sm:$0xff]  }
   0x6   :  { %v1519_v11 = vld [vmem:[%s1922_s3 + $0x8] sm:$0xff]   ;;  %v156_v13 = vld [vmem:[%s1920_s1 + $0x40] sm:$0xff]  ;;  %1346 = vmatprep.subr.bf16.mxu1 %v1518_v10  ;;  %v1520_v14 = vld [vmem:[%s1922_s3 + $0x10] sm:$0xff]  }
   0x7   :  { %v157_v12 = vld [vmem:[%s1920_s1 + $0x48] sm:$0xff]  ;;  %1347 = vmatpush3.bf16.msra.mxu1 %v1518_v10  ;;  %v159_v15 = vld [vmem:[%s1920_s1 + $0x58] sm:$0xff]  ;;  %v158_v16 = vld [vmem:[%s1920_s1 + $0x50] sm:$0xff] }
   0x8   :  { %1348 = vmatprep.subr.bf16.mxu1 %v1519_v11 }
   0x9   :  { %174 = vperm.xlu1 %1517, %v151_v4   ;;  %168 = vperm.xlu0 %1516, %v149_v5  }
   0xb   :  { %1349 = vmatpush3.bf16.msra.mxu1 %v1519_v11 }
   0xd   :  { %180 = vperm.xlu1 %1517, %v153_v6   ;;  %177 = vperm.xlu0 %1516, %v152_v7  }
  0x11   :  { %186 = vperm.xlu1 %1517, %v155_v8   ;;  %183 = vperm.xlu0 %1516, %v154_v9  }
  0x15   :  { %192 = vperm.xlu1 %1517, %v157_v12   ;;  %189 = vperm.xlu0 %1516, %v156_v13  }
  0x16   :  { %18 = vsyncpa [#allocation4], 0  ;;  %1350 = vmatprep.subr.bf16.mxu1 %v1520_v14  ;;  %v161_v17 = vld [vmem:[%s1920_s1 + $0x68] sm:$0xff]  ;;  %v160_v18 = vld [vmem:[%s1920_s1 + $0x60] sm:$0xff]  ;;  %v42_v41 = vlaneseq  ;;  %vm422_vm4 = vcmask 392192   ;;  %v1558_v47 = vmov 0.0  }
  0x17   :  { %1351 = vmatpush3.bf16.msra.mxu1 %v1520_v14  ;;  %v163_v19 = vld [vmem:[%s1920_s1 + $0x78] sm:$0xff]  ;;  %v162_v20 = vld [vmem:[%s1920_s1 + $0x70] sm:$0xff]  ;;  %v45_v21 = vld [vmem:[%s1919_s0 + $0x8] sm:$0xff]  ;;  %s1561_s18 = smov [#allocation3]  }
  0x18   :  { %v44_v22 = vld [vmem:[%s1919_s0] sm:$0xff]  ;;  %v47_v24 = vld [vmem:[%s1919_s0 + $0x18] sm:$0xff]  ;;  %v46_v25 = vld [vmem:[%s1919_s0 + $0x10] sm:$0xff]  ;;  %v1743_v42 = vand.u32 127, %v42_v41  ;;  %s1179_s19 = sshll.u32 %s1561_s18, 4  ;;  %s1180_s19 = int_to_ptr.vmem [resolvable:$true] %s1179_s19 }
  0x19   :  { %198 = vperm.xlu1 %1517, %v159_v15   ;;  %195 = vperm.xlu0 %1516, %v158_v16   ;;  %v1521_v23 = vld [vmem:[%s1921_s2] sm:$0xff]   ;;  %v1522_v26 = vld [vmem:[%s1921_s2 + $0x8] sm:$0xff]   ;;  %v51_v29 = vld [vmem:[%s1919_s0 + $0x38] sm:$0xff]  ;;  %s1537_s20 = scalar_lea.vmem %s1180_s19, 32  ;;  %p1538_p1 = scmp.lt.s32.totalorder %s1180_s19, %s1180_s19 }
  0x1a   :  { %1326 = vmatprep.subr.bf16.mxu0 %v1521_v23  ;;  %v49_v27 = vld [vmem:[%s1919_s0 + $0x28] sm:$0xff]  ;;  %v48_v28 = vld [vmem:[%s1919_s0 + $0x20] sm:$0xff]  ;;  %v50_v30 = vld [vmem:[%s1919_s0 + $0x30] sm:$0xff] }
  0x1b   :  { %1327 = vmatpush3.bf16.msra.mxu0 %v1521_v23  ;;  %v53_v31 = vld [vmem:[%s1919_s0 + $0x48] sm:$0xff]  ;;  %v52_v32 = vld [vmem:[%s1919_s0 + $0x40] sm:$0xff]  ;;  %v55_v33 = vld [vmem:[%s1919_s0 + $0x58] sm:$0xff] }
  0x1c   :  { %1328 = vmatprep.subr.bf16.mxu0 %v1522_v26  ;;  %v54_v34 = vld [vmem:[%s1919_s0 + $0x50] sm:$0xff]  ;;  %v57_v35 = vld [vmem:[%s1919_s0 + $0x68] sm:$0xff]  ;;  %v56_v36 = vld [vmem:[%s1919_s0 + $0x60] sm:$0xff] }
  0x1d   :  { %204 = vperm.xlu1 %1517, %v161_v17   ;;  %201 = vperm.xlu0 %1516, %v160_v18   ;;  %v59_v37 = vld [vmem:[%s1919_s0 + $0x78] sm:$0xff]  ;;  %v58_v38 = vld [vmem:[%s1919_s0 + $0x70] sm:$0xff]  ;;  %v1034_v39 = vld [vmem:[#allocation2] sm:$0x1] }
  0x1e   :  { %v1739_v40 = vld [vmem:[%s1924_s5] sm:$0xff]  }
  0x1f   :  { %1329 = vmatpush3.bf16.msra.mxu0 %v1522_v26 }
  0x20   :  { %1368 = vmatprep.subr.bf16.mxu0 %v1739_v40 }
  0x21   :  { %210 = vperm.xlu1 %1517, %v163_v19   ;;  %207 = vperm.xlu0 %1516, %v162_v20  }
  0x25   :  { %64 = vperm.xlu1 %1517, %v45_v21   ;;  %61 = vperm.xlu0 %1516, %v44_v22  }
  0x29   :  { %70 = vperm.xlu1 %1517, %v47_v24   ;;  %67 = vperm.xlu0 %1516, %v46_v25  }
  0x2d   :  { %76 = vperm.xlu1 %1517, %v49_v27   ;;  %73 = vperm.xlu0 %1516, %v48_v28  }
  0x31   :  { %82 = vperm.xlu1 %1517, %v51_v29   ;;  %79 = vperm.xlu0 %1516, %v50_v30   ;;  %v1524_v30 = vld [vmem:[%s1924_s5 + $0x8] sm:$0xff]  }
  0x35   :  { %88 = vperm.xlu1 %1517, %v53_v31   ;;  %85 = vperm.xlu0 %1516, %v52_v32  }
  0x39   :  { %94 = vperm.xlu1 %1517, %v55_v33   ;;  %91 = vperm.xlu0 %1516, %v54_v34  }
  0x3d   :  { %100 = vperm.xlu1 %1517, %v57_v35   ;;  %97 = vperm.xlu0 %1516, %v56_v36  }
  0x41   :  { %106 = vperm.xlu1 %1517, %v59_v37   ;;  %103 = vperm.xlu0 %1516, %v58_v38  }
  0x45   :  { %1037 = vperm.xlu0 %1516, %v1034_v39  }
  0x84   :  { %v172_v43 = vpop.permute.xlu1 %171  ;;  %v166_v44 = vpop.permute.xlu0 %165 }
  0x85   :  { %vm214_vm0 = vcmp.eq.s32.totalorder %v172_v43, %v1743_v42  ;;  %vm212_vm1 = vcmp.eq.s32.totalorder %v166_v44, %v1743_v42 }
  0x86   :  { %v230_v48 = vsel %vm214_vm0, 1.0, %v1558_v47  ;;  %v228_v49 = vsel %vm212_vm1, 1.0, %v1558_v47 }
  0x88   :  { %v175_v45 = vpop.permute.xlu1 %174  ;;  %v169_v46 = vpop.permute.xlu0 %168 }
  0x89   :  { %vm215_vm2 = vcmp.eq.s32.totalorder %v175_v45, %v1743_v42  ;;  %vm213_vm3 = vcmp.eq.s32.totalorder %v169_v46, %v1743_v42 }
  0x8a   :  { %v231_v50 = vsel %vm215_vm2, 1.0, %v1558_v47  ;;  %v229_v51 = vsel %vm213_vm3, 1.0, %v1558_v47  ;;  %vm268_vm3 = vcmask 261120  }
  0x8b   :  { %v245_v52 = vpack.c.bf16 %v231_v50, %v230_v48  ;;  %v244_v53 = vpack.c.bf16 %v229_v51, %v228_v49 }
  0x8c   :  { %v181_v54 = vpop.permute.xlu1 %180  ;;  %v178_v55 = vpop.permute.xlu0 %177 }
  0x8d   :  { %vm217_vm5 = vcmp.eq.s32.totalorder %v181_v54, %v1743_v42  ;;  %vm216_vm6 = vcmp.eq.s32.totalorder %v178_v55, %v1743_v42  ;;  %1352 = vmatprep.mubr.msk.bf16.mxu1 %vm422_vm4, %v244_v53 }
  0x8e   :  { %v233_v56 = vsel %vm217_vm5, 1.0, %v1558_v47  ;;  %v232_v57 = vsel %vm216_vm6, 1.0, %v1558_v47  ;;  %1353 = vmatmul.mubr.msk.bf16.vlgmr.msra.gmra.mrb[0].mxu1 %vm422_vm4, %v245_v52 }
  0x8f   :  { %v246_v58 = vpack.c.bf16 %v233_v56, %v232_v57 }
  0x90   :  { %v187_v59 = vpop.permute.xlu1 %186  ;;  %v184_v60 = vpop.permute.xlu0 %183 }
  0x91   :  { %vm219_vm7 = vcmp.eq.s32.totalorder %v187_v59, %v1743_v42  ;;  %vm218_vm8 = vcmp.eq.s32.totalorder %v184_v60, %v1743_v42  ;;  %1356 = vmatprep.mubr.msk.bf16.mxu1 %vm422_vm4, %v246_v58 }
  0x92   :  { %v235_v61 = vsel %vm219_vm7, 1.0, %v1558_v47  ;;  %v234_v62 = vsel %vm218_vm8, 1.0, %v1558_v47 }
  0x93   :  { %v247_v63 = vpack.c.bf16 %v235_v61, %v234_v62 }
  0x94   :  { %v193_v0 = vpop.permute.xlu1 %192  ;;  %v190_v1 = vpop.permute.xlu0 %189 }
  0x95   :  { %vm221_vm9 = vcmp.eq.s32.totalorder %v193_v0, %v1743_v42  ;;  %vm220_vm10 = vcmp.eq.s32.totalorder %v190_v1, %v1743_v42  ;;  %v1525_v0 = vld [vmem:[%s1923_s4] sm:$0xff]  }
  0x96   :  { %v237_v2 = vsel %vm221_vm9, 1.0, %v1558_v47  ;;  %v236_v3 = vsel %vm220_vm10, 1.0, %v1558_v47  ;;  %1357 = vmatmul.mubr.msk.bf16.gmra.mrb[4].mxu1 %vm422_vm4, %v247_v63  ;;  %v1527_v1 = vld [vmem:[%s1926_s7] sm:$0xff]  }
  0x97   :  { %v248_v4 = vpack.c.bf16 %v237_v2, %v236_v3  ;;  %1408 = vmatprep.subr.bf16.mxu1 %v1527_v1 }
  0x98   :  { %v199_v5 = vpop.permute.xlu1 %198  ;;  %v196_v6 = vpop.permute.xlu0 %195  ;;  %1409 = vmatpush3.bf16.msra.mxu1 %v1527_v1 }
  0x99   :  { %vm223_vm11 = vcmp.eq.s32.totalorder %v199_v5, %v1743_v42  ;;  %vm222_vm12 = vcmp.eq.s32.totalorder %v196_v6, %v1743_v42  ;;  %1360 = vmatprep.mubr.msk.bf16.mxu1 %vm422_vm4, %v248_v4 }
  0x9a   :  { %v239_v7 = vsel %vm223_vm11, 1.0, %v1558_v47  ;;  %v238_v8 = vsel %vm222_vm12, 1.0, %v1558_v47 }
  0x9b   :  { %v249_v9 = vpack.c.bf16 %v239_v7, %v238_v8  ;;  %v1526_v8 = vld [vmem:[%s1923_s4 + $0x8] sm:$0xff]  }
  0x9c   :  { %v205_v10 = vpop.permute.xlu1 %204  ;;  %v202_v11 = vpop.permute.xlu0 %201 }
  0x9d   :  { %vm225_vm13 = vcmp.eq.s32.totalorder %v205_v10, %v1743_v42  ;;  %vm224_vm14 = vcmp.eq.s32.totalorder %v202_v11, %v1743_v42 }
  0x9e   :  { %v241_v12 = vsel %vm225_vm13, 1.0, %v1558_v47  ;;  %v240_v13 = vsel %vm224_vm14, 1.0, %v1558_v47  ;;  %1361 = vmatmul.mubr.msk.bf16.gmra.mrb[8].mxu1 %vm422_vm4, %v249_v9 }
  0x9f   :  { %v250_v14 = vpack.c.bf16 %v241_v12, %v240_v13 }
  0xa0   :  { %v211_v15 = vpop.permute.xlu1 %210  ;;  %v208_v16 = vpop.permute.xlu0 %207 }
  0xa1   :  { %vm227_vm15 = vcmp.eq.s32.totalorder %v211_v15, %v1743_v42  ;;  %vm226_vm0 = vcmp.eq.s32.totalorder %v208_v16, %v1743_v42  ;;  %1364 = vmatprep.mubr.msk.bf16.mxu1 %vm422_vm4, %v250_v14 }
  0xa2   :  { %v243_v17 = vsel %vm227_vm15, 1.0, %v1558_v47  ;;  %v242_v18 = vsel %vm226_vm0, 1.0, %v1558_v47 }
  0xa3   :  { %v251_v19 = vpack.c.bf16 %v243_v17, %v242_v18 }
  0xa4   :  { %v65_v20 = vpop.permute.xlu1 %64  ;;  %v62_v21 = vpop.permute.xlu0 %61 }
  0xa5   :  { %vm109_vm1 = vcmp.eq.s32.totalorder %v65_v20, %v1743_v42  ;;  %vm108_vm2 = vcmp.eq.s32.totalorder %v62_v21, %v1743_v42 }
  0xa6   :  { %v125_v22 = vsel %vm109_vm1, 1.0, %v1558_v47  ;;  %v124_v23 = vsel %vm108_vm2, 1.0, %v1558_v47  ;;  %1365 = vmatmul.mubr.msk.bf16.gmra.mrb[12].mxu1 %vm422_vm4, %v251_v19  ;;  %vm1560_vm2 = vmmov 0  }
  0xa7   :  { %v140_v24 = vpack.c.bf16 %v125_v22, %v124_v23 }
  0xa8   :  { %v71_v25 = vpop.permute.xlu1 %70  ;;  %v68_v26 = vpop.permute.xlu0 %67 }
  0xa9   :  { %vm111_vm5 = vcmp.eq.s32.totalorder %v71_v25, %v1743_v42  ;;  %vm110_vm6 = vcmp.eq.s32.totalorder %v68_v26, %v1743_v42  ;;  %1330 = vmatprep.mubr.msk.bf16.mxu0 %vm268_vm3, %v140_v24 }
  0xaa   :  { %v127_v27 = vsel %vm111_vm5, 1.0, %v1558_v47  ;;  %v126_v28 = vsel %vm110_vm6, 1.0, %v1558_v47  ;;  %vm1044_vm5 = vcmask 130048  }
  0xab   :  { %v141_v29 = vpack.c.bf16 %v127_v27, %v126_v28 }
  0xac   :  { %v77_v31 = vpop.permute.xlu1 %76  ;;  %v74_v32 = vpop.permute.xlu0 %73 }
  0xad   :  { %vm113_vm4 = vcmp.eq.s32.totalorder %v77_v31, %v1743_v42  ;;  %vm112_vm7 = vcmp.eq.s32.totalorder %v74_v32, %v1743_v42  ;;  %1331 = vmatmul.mubr.msk.bf16.vlgmr.msra.gmra.mrb[0].mxu0 %vm268_vm3, %v141_v29 }
  0xae   :  { %v129_v33 = vsel %vm113_vm4, 1.0, %v1558_v47  ;;  %v128_v34 = vsel %vm112_vm7, 1.0, %v1558_v47  ;;  %1369 = vmatpush3.bf16.msra.mxu0 %v1739_v40 }
  0xaf   :  { %v142_v35 = vpack.c.bf16 %v129_v33, %v128_v34  ;;  %1370 = vmatprep.subr.bf16.mxu0 %v1524_v30 }
  0xb0   :  { %v83_v36 = vpop.permute.xlu1 %82  ;;  %v80_v37 = vpop.permute.xlu0 %79 }
  0xb1   :  { %vm115_vm8 = vcmp.eq.s32.totalorder %v83_v36, %v1743_v42  ;;  %vm114_vm9 = vcmp.eq.s32.totalorder %v80_v37, %v1743_v42  ;;  %1334 = vmatprep.mubr.msk.bf16.mxu0 %vm268_vm3, %v142_v35 }
  0xb2   :  { %v131_v38 = vsel %vm115_vm8, 1.0, %v1558_v47  ;;  %v130_v39 = vsel %vm114_vm9, 1.0, %v1558_v47  ;;  %1371 = vmatpush3.bf16.msra.mxu0 %v1524_v30 }
  0xb3   :  { %v143_v43 = vpack.c.bf16 %v131_v38, %v130_v39  ;;  %1388 = vmatprep.subr.bf16.mxu0 %v1525_v0 }
  0xb4   :  { %v89_v44 = vpop.permute.xlu1 %88  ;;  %v86_v45 = vpop.permute.xlu0 %85 }
  0xb5   :  { %vm117_vm10 = vcmp.eq.s32.totalorder %v89_v44, %v1743_v42  ;;  %vm116_vm11 = vcmp.eq.s32.totalorder %v86_v45, %v1743_v42  ;;  %1335 = vmatmul.mubr.msk.bf16.gmra.mrb[4].mxu0 %vm268_vm3, %v143_v43 }
  0xb6   :  { %v133_v40 = vsel %vm117_vm10, 1.0, %v1558_v47  ;;  %v132_v46 = vsel %vm116_vm11, 1.0, %v1558_v47 }
  0xb7   :  { %v144_v48 = vpack.c.bf16 %v133_v40, %v132_v46 }
  0xb8   :  { %v95_v49 = vpop.permute.xlu1 %94  ;;  %v92_v50 = vpop.permute.xlu0 %91 }
  0xb9   :  { %vm119_vm12 = vcmp.eq.s32.totalorder %v95_v49, %v1743_v42  ;;  %vm118_vm13 = vcmp.eq.s32.totalorder %v92_v50, %v1743_v42  ;;  %1338 = vmatprep.mubr.msk.bf16.mxu0 %vm268_vm3, %v144_v48 }
  0xba   :  { %v135_v51 = vsel %vm119_vm12, 1.0, %v1558_v47  ;;  %v134_v52 = vsel %vm118_vm13, 1.0, %v1558_v47 }
  0xbb   :  { %v145_v53 = vpack.c.bf16 %v135_v51, %v134_v52 }
  0xbc   :  { %v101_v54 = vpop.permute.xlu1 %100  ;;  %v98_v55 = vpop.permute.xlu0 %97 }
  0xbd   :  { %vm121_vm14 = vcmp.eq.s32.totalorder %v101_v54, %v1743_v42  ;;  %vm120_vm15 = vcmp.eq.s32.totalorder %v98_v55, %v1743_v42  ;;  %1339 = vmatmul.mubr.msk.bf16.gmra.mrb[8].mxu0 %vm268_vm3, %v145_v53  ;;  %v1228_v54 = vld [vmem:[%s1925_s6] ss:$0 sm:$0xff] }
  0xbe   :  { %v137_v56 = vsel %vm121_vm14, 1.0, %v1558_v47  ;;  %v136_v57 = vsel %vm120_vm15, 1.0, %v1558_v47 }
  0xbf   :  { %v146_v58 = vpack.c.bf16 %v137_v56, %v136_v57 }
  0xc0   :  { %v107_v59 = vpop.permute.xlu1 %106  ;;  %v104_v60 = vpop.permute.xlu0 %103 }
  0xc1   :  { %vm123_vm0 = vcmp.eq.s32.totalorder %v107_v59, %v1743_v42  ;;  %vm122_vm1 = vcmp.eq.s32.totalorder %v104_v60, %v1743_v42  ;;  %1342 = vmatprep.mubr.msk.bf16.mxu0 %vm268_vm3, %v146_v58  ;;  %v1528_v42 = vld [vmem:[%s1926_s7 + $0x8] sm:$0xff]  }
  0xc2   :  { %v139_v61 = vsel %vm123_vm0, 1.0, %v1558_v47  ;;  %v138_v62 = vsel %vm122_vm1, 1.0, %v1558_v47  ;;  %1410 = vmatprep.subr.bf16.mxu1 %v1528_v42 }
  0xc3   :  { %v147_v63 = vpack.c.bf16 %v139_v61, %v138_v62  ;;  %1411 = vmatpush3.bf16.msra.mxu1 %v1528_v42 }
  0xc5   :  { %1343 = vmatmul.mubr.msk.bf16.gmra.mrb[12].mxu0 %vm268_vm3, %v147_v63 }
 0x161   :  { %v1354_v2 = vpop.f32.mrb[0].mxu1 }
 0x162   :  { %v481_v3 = vpop.f32.mrb[1].mxu1 }
 0x163   :  { %v1355_v4 = vpop.f32.mrb[2].mxu1 }
 0x164   :  { %v545_v5 = vpack.c.bf16 %v1355_v4, %v1354_v2  ;;  %v484_v6 = vpop.f32.mrb[3].mxu1 }
 0x165   :  { %v544_v7 = vpack.c.bf16 %v484_v6, %v481_v3 }
 0x167   :  { %1372 = vmatprep.mubr.msk.bf16.mxu0 %vm268_vm3, %v544_v7 }
 0x168   :  { %1373 = vmatmul.mubr.msk.bf16.vlgmr.msra.gmra.mrb[16].mxu0 %vm268_vm3, %v545_v5 }
 0x169   :  { %1389 = vmatpush3.bf16.msra.mxu0 %v1525_v0  ;;  %v1358_v9 = vpop.f32.mrb[4].mxu1 }
 0x16a   :  { %v497_v10 = vpop.f32.mrb[5].mxu1  ;;  %1390 = vmatprep.subr.bf16.mxu0 %v1526_v8 }
 0x16b   :  { %v1359_v11 = vpop.f32.mrb[6].mxu1 }
 0x16c   :  { %v547_v12 = vpack.c.bf16 %v1359_v11, %v1358_v9  ;;  %v500_v13 = vpop.f32.mrb[7].mxu1 }
 0x16d   :  { %v546_v14 = vpack.c.bf16 %v500_v13, %v497_v10  ;;  %1391 = vmatpush3.bf16.msra.mxu0 %v1526_v8 }
 0x16f   :  { %1376 = vmatprep.mubr.msk.bf16.mxu0 %vm268_vm3, %v546_v14 }
 0x170   :  { %1377 = vmatmul.mubr.msk.bf16.gmra.mrb[20].mxu0 %vm268_vm3, %v547_v12 }
 0x171   :  { %v1362_v15 = vpop.f32.mrb[8].mxu1 }
 0x172   :  { %v513_v16 = vpop.f32.mrb[9].mxu1 }
 0x173   :  { %v1363_v17 = vpop.f32.mrb[10].mxu1 }
 0x174   :  { %v549_v18 = vpack.c.bf16 %v1363_v17, %v1362_v15  ;;  %v516_v19 = vpop.f32.mrb[11].mxu1 }
 0x175   :  { %v548_v20 = vpack.c.bf16 %v516_v19, %v513_v16 }
 0x177   :  { %1380 = vmatprep.mubr.msk.bf16.mxu0 %vm268_vm3, %v548_v20 }
 0x178   :  { %1381 = vmatmul.mubr.msk.bf16.gmra.mrb[24].mxu0 %vm268_vm3, %v549_v18 }
 0x179   :  { %v1366_v21 = vpop.f32.mrb[12].mxu1 }
 0x17a   :  { %v529_v22 = vpop.f32.mrb[13].mxu1 }
 0x17b   :  { %v1367_v23 = vpop.f32.mrb[14].mxu1 }
 0x17c   :  { %v551_v24 = vpack.c.bf16 %v1367_v23, %v1366_v21  ;;  %v532_v25 = vpop.f32.mrb[15].mxu1 }
 0x17d   :  { %v550_v26 = vpack.c.bf16 %v532_v25, %v529_v22 }
 0x17f   :  { %1384 = vmatprep.mubr.msk.bf16.mxu0 %vm268_vm3, %v550_v26 }
 0x180   :  { %v1332_v27 = vpop.f32.mrb[0].mxu0  ;;  %1385 = vmatmul.mubr.msk.bf16.gmra.mrb[28].mxu0 %vm268_vm3, %v551_v24 }
 0x181   :  { %v327_v28 = vpop.f32.mrb[1].mxu0 }
 0x182   :  { %v1333_v29 = vpop.f32.mrb[2].mxu0 }
 0x183   :  { %v391_v30 = vpack.c.bf16 %v1333_v29, %v1332_v27  ;;  %v330_v31 = vpop.f32.mrb[3].mxu0 }
 0x184   :  { %v390_v32 = vpack.c.bf16 %v330_v31, %v327_v28 }
 0x186   :  { %1392 = vmatprep.mubr.msk.bf16.mxu0 %vm268_vm3, %v390_v32 }
 0x188   :  { %v1336_v33 = vpop.f32.mrb[4].mxu0  ;;  %1393 = vmatmul.mubr.msk.bf16.vlgmr.msra.gmra.mrb[16].mxu0 %vm268_vm3, %v391_v30 }
 0x189   :  { %v343_v34 = vpop.f32.mrb[5].mxu0 }
 0x18a   :  { %v1337_v35 = vpop.f32.mrb[6].mxu0 }
 0x18b   :  { %v393_v36 = vpack.c.bf16 %v1337_v35, %v1336_v33  ;;  %v346_v37 = vpop.f32.mrb[7].mxu0 }
 0x18c   :  { %v392_v38 = vpack.c.bf16 %v346_v37, %v343_v34 }
 0x18e   :  { %1396 = vmatprep.mubr.msk.bf16.mxu0 %vm268_vm3, %v392_v38 }
 0x190   :  { %v1340_v39 = vpop.f32.mrb[8].mxu0  ;;  %1397 = vmatmul.mubr.msk.bf16.gmra.mrb[20].mxu0 %vm268_vm3, %v393_v36 }
 0x191   :  { %v359_v43 = vpop.f32.mrb[9].mxu0 }
 0x192   :  { %v1341_v44 = vpop.f32.mrb[10].mxu0 }
 0x193   :  { %v395_v45 = vpack.c.bf16 %v1341_v44, %v1340_v39  ;;  %v362_v40 = vpop.f32.mrb[11].mxu0 }
 0x194   :  { %v394_v46 = vpack.c.bf16 %v362_v40, %v359_v43 }
 0x196   :  { %1400 = vmatprep.mubr.msk.bf16.mxu0 %vm268_vm3, %v394_v46 }
 0x198   :  { %v1344_v48 = vpop.f32.mrb[12].mxu0  ;;  %1401 = vmatmul.mubr.msk.bf16.gmra.mrb[24].mxu0 %vm268_vm3, %v395_v45 }
 0x199   :  { %v375_v49 = vpop.f32.mrb[13].mxu0 }
 0x19a   :  { %v1345_v50 = vpop.f32.mrb[14].mxu0 }
 0x19b   :  { %v397_v51 = vpack.c.bf16 %v1345_v50, %v1344_v48  ;;  %v378_v52 = vpop.f32.mrb[15].mxu0  ;;  %v1229_v50 = vld [vmem:[%s1927_s8] ss:$0 sm:$0xff] }
 0x19c   :  { %v396_v53 = vpack.c.bf16 %v378_v52, %v375_v49  ;;  %v1559_v49 = vmov 0.0|0.0  }
 0x19d   :  { %1463 = vmatprep.subr.bf16.mxu1 %v1559_v49 }
 0x19e   :  { %1404 = vmatprep.mubr.msk.bf16.mxu0 %vm268_vm3, %v396_v53 }
 0x1a0   :  { %1405 = vmatmul.mubr.msk.bf16.gmra.mrb[28].mxu0 %vm268_vm3, %v397_v51 }
 0x25b   :  { %v1394_v55 = vpop.f32.mrb[16].mxu0 }
 0x25c   :  { %v835_v56 = vadd.f32 %v1394_v55, %v1228_v54  ;;  %v763_v57 = vpop.f32.mrb[17].mxu0 }
 0x25d   :  { %v833_v58 = vadd.f32 %v1228_v54, %v763_v57  ;;  %v1395_v59 = vpop.f32.mrb[18].mxu0 }
 0x25e   :  { %v836_v60 = vadd.f32 %v1395_v59, %v1228_v54  ;;  %v766_v61 = vpop.f32.mrb[19].mxu0  ;;  %v851_v63 = vmax.f32 %v835_v56, 0.0 }
 0x25f   :  { %v834_v62 = vadd.f32 %v1228_v54, %v766_v61  ;;  %v849_v1 = vmax.f32 %v833_v58, 0.0 }
 0x260   :  { %v852_v0 = vmax.f32 %v836_v60, 0.0 }
 0x261   :  { %v850_v42 = vmax.f32 %v834_v62, 0.0 }
 0x262   :  { %v866_v2 = vpack.c.bf16 %v852_v0, %v851_v63 }
 0x263   :  { %v865_v3 = vpack.c.bf16 %v850_v42, %v849_v1  ;;  %v1398_v4 = vpop.f32.mrb[20].mxu0 }
 0x264   :  { %v839_v5 = vadd.f32 %v1398_v4, %v1228_v54  ;;  %v779_v6 = vpop.f32.mrb[21].mxu0 }
 0x265   :  { %v837_v7 = vadd.f32 %v1228_v54, %v779_v6  ;;  %v1399_v8 = vpop.f32.mrb[22].mxu0  ;;  %1412 = vmatprep.mubr.msk.bf16.mxu1 %vm268_vm3, %v865_v3 }
 0x266   :  { %v840_v9 = vadd.f32 %v1399_v8, %v1228_v54  ;;  %v782_v10 = vpop.f32.mrb[23].mxu0  ;;  %1413 = vmatmul.mubr.msk.bf16.vlgmr.msra.gmra.mrb[16].mxu1 %vm268_vm3, %v866_v2  ;;  %v855_v12 = vmax.f32 %v839_v5, 0.0 }
 0x267   :  { %v838_v11 = vadd.f32 %v1228_v54, %v782_v10  ;;  %v853_v14 = vmax.f32 %v837_v7, 0.0 }
 0x268   :  { %v856_v13 = vmax.f32 %v840_v9, 0.0 }
 0x269   :  { %v854_v15 = vmax.f32 %v838_v11, 0.0 }
 0x26a   :  { %v868_v16 = vpack.c.bf16 %v856_v13, %v855_v12 }
 0x26b   :  { %v867_v17 = vpack.c.bf16 %v854_v15, %v853_v14  ;;  %v1402_v18 = vpop.f32.mrb[24].mxu0 }
 0x26c   :  { %v843_v19 = vadd.f32 %v1402_v18, %v1228_v54  ;;  %v795_v20 = vpop.f32.mrb[25].mxu0 }
 0x26d   :  { %v841_v21 = vadd.f32 %v1228_v54, %v795_v20  ;;  %v1403_v22 = vpop.f32.mrb[26].mxu0  ;;  %1416 = vmatprep.mubr.msk.bf16.mxu1 %vm268_vm3, %v867_v17 }
 0x26e   :  { %v844_v23 = vadd.f32 %v1403_v22, %v1228_v54  ;;  %v798_v24 = vpop.f32.mrb[27].mxu0  ;;  %1417 = vmatmul.mubr.msk.bf16.gmra.mrb[20].mxu1 %vm268_vm3, %v868_v16  ;;  %v859_v26 = vmax.f32 %v843_v19, 0.0 }
 0x26f   :  { %v842_v25 = vadd.f32 %v1228_v54, %v798_v24  ;;  %v857_v28 = vmax.f32 %v841_v21, 0.0 }
 0x270   :  { %v860_v27 = vmax.f32 %v844_v23, 0.0 }
 0x271   :  { %v858_v29 = vmax.f32 %v842_v25, 0.0 }
 0x272   :  { %v870_v30 = vpack.c.bf16 %v860_v27, %v859_v26 }
 0x273   :  { %v869_v31 = vpack.c.bf16 %v858_v29, %v857_v28  ;;  %v1406_v32 = vpop.f32.mrb[28].mxu0 }
 0x274   :  { %v847_v33 = vadd.f32 %v1406_v32, %v1228_v54  ;;  %v811_v34 = vpop.f32.mrb[29].mxu0 }
 0x275   :  { %v845_v35 = vadd.f32 %v1228_v54, %v811_v34  ;;  %v1407_v36 = vpop.f32.mrb[30].mxu0  ;;  %1420 = vmatprep.mubr.msk.bf16.mxu1 %vm268_vm3, %v869_v31 }
 0x276   :  { %v848_v37 = vadd.f32 %v1407_v36, %v1228_v54  ;;  %v814_v38 = vpop.f32.mrb[31].mxu0  ;;  %1421 = vmatmul.mubr.msk.bf16.gmra.mrb[24].mxu1 %vm268_vm3, %v870_v30  ;;  %v863_v43 = vmax.f32 %v847_v33, 0.0 }
 0x277   :  { %v846_v39 = vadd.f32 %v1228_v54, %v814_v38  ;;  %v861_v45 = vmax.f32 %v845_v35, 0.0 }
 0x278   :  { %v864_v44 = vmax.f32 %v848_v37, 0.0 }
 0x279   :  { %v862_v40 = vmax.f32 %v846_v39, 0.0 }
 0x27a   :  { %v872_v46 = vpack.c.bf16 %v864_v44, %v863_v43 }
 0x27b   :  { %v871_v48 = vpack.c.bf16 %v862_v40, %v861_v45  ;;  %v1033_v45 = vld [vmem:[%s1928_s9] sm:$0x1]  ;;  %v1041_v40 = vshrl.u32 %v42_v41, 7  ;;  %s1533_s9 = scalar_lea.vmem %s1180_s19, 16 }
 0x27c   :  { %p1534_p0 = scmp.ne.s32.totalorder %s1180_s19, %s1533_s9  ;;  %p1539_p2 = scmp.lt.s32.totalorder %s1537_s20, %s1533_s9 }
 0x27d   :  { %1424 = vmatprep.mubr.msk.bf16.mxu1 %vm268_vm3, %v871_v48  ;;  %v1038_v48 = vpop.permute.xlu0 %1037 }
 0x27e   :  { %1425 = vmatmul.mubr.msk.bf16.gmra.mrb[28].mxu1 %vm268_vm3, %v872_v46  ;;  %vm1875_vm3 = vmpackc.low %vm1044_vm5, %vm1044_vm5  ;;  %v1042_v46 = vsub.s32 0, %v1041_v40  ;;  %p1540_p3 = por %p1539_p2, %p1538_p1 }
 0x27f   :  { %1460 = vmatprep.mubr.msk.f32.mxu1 %vm1560_vm2, %v1558_v47 }
 0x280   :  { %p1541_p4 = pnand %p1540_p3, %p1534_p0 }
 0x339   :  { %v1414_v51 = vpop.f32.mrb[16].mxu1 }
 0x33a   :  { %v963_v52 = vadd.f32 %v1414_v51, %v1229_v50  ;;  %v954_v53 = vpop.f32.mrb[17].mxu1 }
 0x33b   :  { %v955_v54 = vadd.f32 %v1229_v50, %v954_v53  ;;  %v1415_v55 = vpop.f32.mrb[18].mxu1 }
 0x33c   :  { %v966_v56 = vadd.f32 %v1415_v55, %v1229_v50  ;;  %v957_v57 = vpop.f32.mrb[19].mxu1  ;;  %v1019_v59 = vmax.f32 %v963_v52, 0.0 }
 0x33d   :  { %v958_v58 = vadd.f32 %v1229_v50, %v957_v57  ;;  %v1017_v61 = vmax.f32 %v955_v54, 0.0 }
 0x33e   :  { %v1020_v60 = vmax.f32 %v966_v56, 0.0 }
 0x33f   :  { %v1018_v62 = vmax.f32 %v958_v58, 0.0 }
 0x340   :  { %v1468_v63 = vpack.c.bf16 %v1020_v60, %v1019_v59 }
 0x341   :  { %v1464_v0 = vpack.c.bf16 %v1018_v62, %v1017_v61  ;;  %v1418_v1 = vpop.f32.mrb[20].mxu1 }
 0x342   :  { %v979_v42 = vadd.f32 %v1418_v1, %v1229_v50  ;;  %v970_v2 = vpop.f32.mrb[21].mxu1 }
 0x343   :  { %v971_v3 = vadd.f32 %v1229_v50, %v970_v2  ;;  %v1419_v4 = vpop.f32.mrb[22].mxu1  ;;  %1466 = vmatpush3.bf16.xpose.msk.msra.mxu1 %vm1875_vm3, %v1464_v0 }
 0x344   :  { %v982_v5 = vadd.f32 %v1419_v4, %v1229_v50  ;;  %v973_v6 = vpop.f32.mrb[23].mxu1  ;;  %1467 = vmatprep.subr.bf16.mxu1 %v1559_v49  ;;  %v1023_v8 = vmax.f32 %v979_v42, 0.0 }
 0x345   :  { %v974_v7 = vadd.f32 %v1229_v50, %v973_v6  ;;  %v1021_v10 = vmax.f32 %v971_v3, 0.0 }
 0x346   :  { %v1024_v9 = vmax.f32 %v982_v5, 0.0 }
 0x347   :  { %v1022_v11 = vmax.f32 %v974_v7, 0.0 }
 0x348   :  { %v1476_v12 = vpack.c.bf16 %v1024_v9, %v1023_v8 }
 0x349   :  { %v1472_v13 = vpack.c.bf16 %v1022_v11, %v1021_v10  ;;  %v1422_v14 = vpop.f32.mrb[24].mxu1 }
 0x34a   :  { %v995_v15 = vadd.f32 %v1422_v14, %v1229_v50  ;;  %v986_v16 = vpop.f32.mrb[25].mxu1 }
 0x34b   :  { %v987_v17 = vadd.f32 %v1229_v50, %v986_v16  ;;  %v1423_v18 = vpop.f32.mrb[26].mxu1  ;;  %1470 = vmatpush3.bf16.xpose.msk.msra.mxu1 %vm1875_vm3, %v1468_v63 }
 0x34c   :  { %v998_v19 = vadd.f32 %v1423_v18, %v1229_v50  ;;  %v989_v20 = vpop.f32.mrb[27].mxu1  ;;  %1471 = vmatprep.subr.bf16.mxu1 %v1559_v49  ;;  %v1027_v22 = vmax.f32 %v995_v15, 0.0 }
 0x34d   :  { %v990_v21 = vadd.f32 %v1229_v50, %v989_v20  ;;  %v1025_v24 = vmax.f32 %v987_v17, 0.0 }
 0x34e   :  { %v1028_v23 = vmax.f32 %v998_v19, 0.0 }
 0x34f   :  { %v1026_v25 = vmax.f32 %v990_v21, 0.0 }
 0x350   :  { %v1484_v26 = vpack.c.bf16 %v1028_v23, %v1027_v22 }
 0x351   :  { %v1480_v27 = vpack.c.bf16 %v1026_v25, %v1025_v24  ;;  %v1426_v28 = vpop.f32.mrb[28].mxu1 }
 0x352   :  { %v1011_v29 = vadd.f32 %v1426_v28, %v1229_v50  ;;  %v1002_v30 = vpop.f32.mrb[29].mxu1 }
 0x353   :  { %v1003_v31 = vadd.f32 %v1229_v50, %v1002_v30  ;;  %v1427_v32 = vpop.f32.mrb[30].mxu1  ;;  %1474 = vmatpush3.bf16.xpose.msk.msra.mxu1 %vm1875_vm3, %v1472_v13 }
 0x354   :  { %v1014_v33 = vadd.f32 %v1427_v32, %v1229_v50  ;;  %v1005_v34 = vpop.f32.mrb[31].mxu1  ;;  %1475 = vmatprep.subr.bf16.mxu1 %v1559_v49  ;;  %v1031_v36 = vmax.f32 %v1011_v29, 0.0 }
 0x355   :  { %v1006_v35 = vadd.f32 %v1229_v50, %v1005_v34  ;;  %v1029_v38 = vmax.f32 %v1003_v31, 0.0  ;;  %v1043_v50 = vrot.slane %v1038_v48, %v1042_v46 }
 0x356   :  { %v1032_v37 = vmax.f32 %v1014_v33, 0.0 }
 0x357   :  { %v1030_v39 = vmax.f32 %v1006_v35, 0.0 }
 0x358   :  { %v1492_v43 = vpack.c.bf16 %v1032_v37, %v1031_v36 }
 0x359   :  { %v1488_v44 = vpack.c.bf16 %v1030_v39, %v1029_v38 }
 0x35b   :  { %1478 = vmatpush3.bf16.xpose.msk.msra.mxu1 %vm1875_vm3, %v1476_v12 }
 0x35c   :  { %1479 = vmatprep.subr.bf16.mxu1 %v1559_v49 }
 0x363   :  { %1482 = vmatpush3.bf16.xpose.msk.msra.mxu1 %vm1875_vm3, %v1480_v27 }
 0x364   :  { %1483 = vmatprep.subr.bf16.mxu1 %v1559_v49 }
 0x36b   :  { %1486 = vmatpush3.bf16.xpose.msk.msra.mxu1 %vm1875_vm3, %v1484_v26 }
 0x36c   :  { %1487 = vmatprep.subr.bf16.mxu1 %v1559_v49 }
 0x373   :  { %1490 = vmatpush3.bf16.xpose.msk.msra.mxu1 %vm1875_vm3, %v1488_v44 }
 0x374   :  { %1491 = vmatprep.subr.bf16.mxu1 %v1559_v49 }
 0x37b   :  { %1494 = vmatpush3.bf16.xpose.msk.msra.mxu1 %vm1875_vm3, %v1492_v43 }
 0x382   :  { %1461 = vmatmul.mubr.msk.f32.vlgmr.msra.gmra.mrb[32].mxu1 %vm1044_vm5, %v1033_v45 }
 0x455   :  { %v1162_v51 = vpop.f32.mrb[32].mxu1 }
 0x456   :  { %v1163_v52 = vadd.f32 %v1162_v51, %v1043_v50  ;;  %v1462_v53 = vpop.f32.mrb[33].mxu1 }
 0x458   :  { %v1257_v54 = vmul.f32 -1.442695, %v1163_v52 }
 0x45a   :  { %1529 = vpow2.f32 %v1257_v54 }
 0x464   :  { %v1530_v49 = vpop.eup %1529 }
 0x465   :  { %v1169_v55 = vadd.f32 1.0, %v1530_v49 }
 0x467   :  { %1531 = vrcp.f32 %v1169_v55 }
 0x471   :  { %v1532_v56 = vpop.eup %1531 }
 0x472   :  { %1172 = vst [vmem:[#allocation3] sm:$0x1] %v1532_v56 }
 0x473   :  { %1544 = shalt.err (!%p1541_p4)
}
 0x474   :  { %s1545_s23 = scalar_lea.hbm %s1930_s11, 16 }
 0x475   :  { %p1546_p5 = scmp.ne.s32.totalorder %s1930_s11, %s1545_s23  ;;  %p1549_p6 = scmp.lt.u32.totalorder %s1545_s23, %s1930_s11 }
 0x477   :  { %p1551_p7 = pnand %p1549_p6, %p1546_p5 }
 0x479   :  { %1554 = shalt.err (!%p1551_p7)
}
 0x47a   :  { %1182 = dma.vmem_to_hbm [thread:$0]  %s1180_s19, 16, %s1930_s11, [#allocation4]  }
 0x47b   :  { %1555 = dma.done.wait [#allocation4], 16  }
 0x47c   :  { %1556 = vsyncadd [#allocation4], 4294967280 }
 0x47d   :  { %1186 = vsyncpa [#allocation4], 1 }

</bundles_post_ra>
